<compile_context>
chip_gen: v6e
topology: v6e:2x2x1
jax: 0.10.0
libtpu: 0.0.40
codegen_flags: <defaults>
</compile_context>

<pallas_src>
import functools

import jax
import jax.numpy as jnp
from jax.experimental import pallas as pl
from jax.experimental.pallas import tpu as pltpu

LANE = 128   # lane (last-dim) tile
SUB = 8      # sublane tile


def _cdiv(a, b):
    return -(-a // b)


def _round_up(v, m):
    return _cdiv(v, m) * m


def _model_kernel(x_ref, wlr_ref, wp_ref, o_ref):
    """One batch tile.

      x_ref  : (TB, n_in)   input dtype (feature dim NOT padded)
      wlr_ref: (n_in, 2*Hp) f32   fused [W_l^T | W_r^T]
      wp_ref : (Hp, Op)     bf16  W_p^T
      o_ref  : (TB, Op)     bf16

      h_lr = x @ [W_l | W_r]   (VPU broadcast-accumulate over tiny K, f32)
      h    = h_lr[:, :Hp] * h_lr[:, Hp:]    (f32 gate)
      out  = h @ W_p^T          (MXU, bf16 operands, f32 accumulation)
    """
    n_in = x_ref.shape[1]
    hp = wp_ref.shape[0]

    x = x_ref[...].astype(jnp.float32)          # (TB, n_in) f32
    w_lr = wlr_ref[...]                         # (n_in, 2*Hp) f32

    # Input projection on the VPU: K = n_in is tiny (4), so an unrolled
    # broadcast-MAC avoids padding x's feature dim to 128 lanes and skips a
    # nearly-empty MXU pass.  (For large n_inputs, switch to jnp.dot.)
    h_lr = x[:, 0:1] * w_lr[0:1, :]             # (TB, 2*Hp) f32
    for k in range(1, n_in):
        h_lr = h_lr + x[:, k:k + 1] * w_lr[k:k + 1, :]

    h = h_lr[:, :hp] * h_lr[:, hp:]             # f32 gate (v5e: no bf16 VPU)

    o_ref[...] = jnp.dot(h.astype(wp_ref.dtype), wp_ref[...],
                         preferred_element_type=jnp.float32
                         ).astype(o_ref.dtype)  # (TB, Op) bf16, lane-dense


def _pad_to(a, rows, cols):
    r, c = a.shape
    return jnp.pad(a, ((0, rows - r), (0, cols - c)))


def prepare_params(w_l, w_r, w_p, head_dtype=jnp.bfloat16):
    """One-time weight prep (transpose + pad + cast). Keep OUT of the hot path.

    w_l, w_r: [n_hidden, n_inputs] (PyTorch layout), w_p: [n_outputs, n_hidden].
    Returns:
      w_lr : [n_inputs, 2*Hp] f32  = [W_l^T | W_r^T], hidden dim padded to 128,
                                      feature (K) dim left UNPADDED
      wp_t : [Hp, Op]        bf16  = W_p^T padded to 128x128
    """
    n_hidden, _ = w_l.shape
    n_out = w_p.shape[0]
    Hp = _round_up(max(n_hidden, 1), LANE)
    Op = _round_up(max(n_out, 1), LANE)

    wl_t = _pad_to(w_l.T.astype(jnp.float32), w_l.shape[1], Hp)
    wr_t = _pad_to(w_r.T.astype(jnp.float32), w_r.shape[1], Hp)
    w_lr = jnp.concatenate([wl_t, wr_t], axis=1)                    # (n_in, 2*Hp) f32
    wp_t = _pad_to(w_p.T.astype(jnp.float32), Hp, Op).astype(head_dtype)
    return w_lr, wp_t


@functools.partial(jax.jit, static_argnames=("batch_tile",))
def model_forward_padded(x, w_lr, wp_t, batch_tile=1024):
    """x: [B, n_inputs] float.  Weights from prepare_params().

    Returns the PADDED output [Bp, Op] in bf16 (Op = 128-rounded n_outputs,
    Bp = 8-rounded/tile-balanced batch).  Consumers should slice [:B, :n_out]
    themselves (or fuse the slice into the next op) -- keeping the slice out
    of this function avoids an extra full-buffer HBM copy.
    """
    B, n_in = x.shape
    _, Hp2 = w_lr.shape
    Hp, Op = wp_t.shape

    # --- batch tiling ------------------------------------------------------
    # TB is a multiple of 8 (sublane constraint); tiles are balanced so batch
    # padding overshoot is < 8 rows per grid step; grid has >= 2 steps when
    # B > 8 so v7x's two TensorCores both get work ("parallel" axis).
    Bp8 = _round_up(B, SUB)
    tb0 = max(SUB, _round_up(min(batch_tile, Bp8), SUB))
    nsteps = _cdiv(Bp8, tb0)
    if Bp8 >= 2 * SUB:
        nsteps = max(nsteps, 2)
    TB = _round_up(_cdiv(Bp8, nsteps), SUB)
    Bp = nsteps * TB

    # Only the batch dim of x is padded (cheap: 16 B/row); feature dim stays
    # unpadded, so no 128-lane x copy is ever materialized.
    x_p = x if Bp == B else jnp.pad(x, ((0, Bp - B), (0, 0)))

    out = pl.pallas_call(
        _model_kernel,
        out_shape=jax.ShapeDtypeStruct((Bp, Op), wp_t.dtype),
        grid_spec=pltpu.PrefetchScalarGridSpec(
            num_scalar_prefetch=0,
            grid=(nsteps,),
            in_specs=[
                pl.BlockSpec((TB, n_in), lambda i: (i, 0)),   # x: batch-tiled, K unpadded
                pl.BlockSpec((n_in, Hp2), lambda i: (0, 0)),  # fused LR weight (resident)
                pl.BlockSpec((Hp, Op), lambda i: (0, 0)),     # head weight (resident)
            ],
            out_specs=pl.BlockSpec((TB, Op), lambda i: (i, 0)),
        ),
        compiler_params=pltpu.CompilerParams(
            dimension_semantics=("parallel",),
        ),
    )(x_p, w_lr, wp_t)

    return out


def _init_linear_weight(key, out_features, in_features):
    # Deterministic stand-in for PyTorch nn.Linear default init:
    # U(-1/sqrt(fan_in), +1/sqrt(fan_in)).
    bound = 1.0 / jnp.sqrt(jnp.float32(in_features))
    return jax.random.uniform(key, (out_features, in_features),
                              dtype=jnp.float32, minval=-bound, maxval=bound)


if __name__ == "__main__":
    # Config defaults: n_inputs=4, n_hidden=4, n_outputs=6, bias=False.
    n_inputs, n_hidden, n_outputs = 4, 4, 6

    key = jax.random.PRNGKey(0)
    k_x, k_l, k_r, k_p = jax.random.split(key, 4)

    w_l = _init_linear_weight(k_l, n_hidden, n_inputs)    # left.weight
    w_r = _init_linear_weight(k_r, n_hidden, n_inputs)    # right.weight
    w_p = _init_linear_weight(k_p, n_outputs, n_hidden)   # head.weight

    # One-time weight prep (cache these in a real model).
    w_lr, wp_t = prepare_params(w_l, w_r, w_p)

    # Small demo batch (exercises the 2-step grid) plus the cfg batch_size=512.
    for batch in (16, 512):
        kx = jax.random.fold_in(k_x, batch)
        # Inputs mimic generate_batch(): random booleans cast to float.
        x = (jax.random.uniform(kx, (batch, n_inputs)) > 0.7).astype(jnp.float32)

        y_pad = jax.block_until_ready(model_forward_padded(x, w_lr, wp_t))

        # Consumer-side slice (outside the kernel's hot path).
        y = jnp.asarray(y_pad[:batch, :n_outputs], dtype=jnp.float32)

        # Reference check in plain JAX (same math as the PyTorch forward, f32).
        y_ref = ((x @ w_l.T) * (x @ w_r.T)) @ w_p.T
        assert y.shape == (batch, n_outputs)
        err = float(jnp.max(jnp.abs(y - y_ref)))
        # bf16 head-matmul operands + bf16 output -> looser than pure f32.
        assert err < 2e-2, f"batch={batch}: max abs err {err}"

    print("KERNEL_OK")
</pallas_src>

<mosaic_0001>
module attributes {stable_mosaic.version = 11 : i64} {
  func.func @_model_kernel(%arg0: i32, %arg1: memref<8x4xf32, #tpu.memory_space<vmem>>, %arg2: memref<4x256xf32, #tpu.memory_space<vmem>>, %arg3: memref<128x128xbf16, #tpu.memory_space<vmem>>, %arg4: memref<8x128xbf16, #tpu.memory_space<vmem>>) attributes {dimension_semantics = [#tpu.dimension_semantics<parallel>], iteration_bounds = array<i64: 2>, scalar_prefetch = 0 : i64, scratch_operands = 0 : i64, tpu.core_type = #tpu.core_type<tc>, window_params = [{transform_indices = @transform_0, window_bounds = array<i64: 8, 4>}, {pipeline_mode = #tpu.pipeline_mode<synchronous>, transform_indices = @transform_1, window_bounds = array<i64: 4, 256>}, {pipeline_mode = #tpu.pipeline_mode<synchronous>, transform_indices = @transform_2, window_bounds = array<i64: 128, 128>}, {transform_indices = @transform_3, window_bounds = array<i64: 8, 128>}]} {
    %c0 = arith.constant 0 : index
    %c0_0 = arith.constant 0 : index
    %0 = vector.load %arg1[%c0, %c0_0] : memref<8x4xf32, #tpu.memory_space<vmem>>, vector<8x4xf32>
    %c0_1 = arith.constant 0 : index
    %c0_2 = arith.constant 0 : index
    %1 = vector.load %arg2[%c0_1, %c0_2] : memref<4x256xf32, #tpu.memory_space<vmem>>, vector<4x256xf32>
    %2 = vector.extract_strided_slice %0 {offsets = [0, 0], sizes = [8, 1], strides = [1, 1]} : vector<8x4xf32> to vector<8x1xf32>
    %3 = vector.extract_strided_slice %1 {offsets = [0, 0], sizes = [1, 256], strides = [1, 1]} : vector<4x256xf32> to vector<1x256xf32>
    %4 = vector.broadcast %2 : vector<8x1xf32> to vector<8x256xf32>
    %5 = vector.broadcast %3 : vector<1x256xf32> to vector<8x256xf32>
    %6 = arith.mulf %4, %5 : vector<8x256xf32>
    %7 = vector.extract_strided_slice %0 {offsets = [0, 1], sizes = [8, 1], strides = [1, 1]} : vector<8x4xf32> to vector<8x1xf32>
    %8 = vector.extract_strided_slice %1 {offsets = [1, 0], sizes = [1, 256], strides = [1, 1]} : vector<4x256xf32> to vector<1x256xf32>
    %9 = vector.broadcast %7 : vector<8x1xf32> to vector<8x256xf32>
    %10 = vector.broadcast %8 : vector<1x256xf32> to vector<8x256xf32>
    %11 = arith.mulf %9, %10 : vector<8x256xf32>
    %12 = arith.addf %6, %11 : vector<8x256xf32>
    %13 = vector.extract_strided_slice %0 {offsets = [0, 2], sizes = [8, 1], strides = [1, 1]} : vector<8x4xf32> to vector<8x1xf32>
    %14 = vector.extract_strided_slice %1 {offsets = [2, 0], sizes = [1, 256], strides = [1, 1]} : vector<4x256xf32> to vector<1x256xf32>
    %15 = vector.broadcast %13 : vector<8x1xf32> to vector<8x256xf32>
    %16 = vector.broadcast %14 : vector<1x256xf32> to vector<8x256xf32>
    %17 = arith.mulf %15, %16 : vector<8x256xf32>
    %18 = arith.addf %12, %17 : vector<8x256xf32>
    %19 = vector.extract_strided_slice %0 {offsets = [0, 3], sizes = [8, 1], strides = [1, 1]} : vector<8x4xf32> to vector<8x1xf32>
    %20 = vector.extract_strided_slice %1 {offsets = [3, 0], sizes = [1, 256], strides = [1, 1]} : vector<4x256xf32> to vector<1x256xf32>
    %21 = vector.broadcast %19 : vector<8x1xf32> to vector<8x256xf32>
    %22 = vector.broadcast %20 : vector<1x256xf32> to vector<8x256xf32>
    %23 = arith.mulf %21, %22 : vector<8x256xf32>
    %24 = arith.addf %18, %23 : vector<8x256xf32>
    %25 = vector.extract_strided_slice %24 {offsets = [0, 0], sizes = [8, 128], strides = [1, 1]} : vector<8x256xf32> to vector<8x128xf32>
    %26 = vector.extract_strided_slice %24 {offsets = [0, 128], sizes = [8, 128], strides = [1, 1]} : vector<8x256xf32> to vector<8x128xf32>
    %27 = arith.mulf %25, %26 : vector<8x128xf32>
    %28 = arith.truncf %27 : vector<8x128xf32> to vector<8x128xbf16>
    %c0_3 = arith.constant 0 : index
    %c0_4 = arith.constant 0 : index
    %29 = vector.load %arg3[%c0_3, %c0_4] : memref<128x128xbf16, #tpu.memory_space<vmem>>, vector<128x128xbf16>
    %cst = arith.constant dense<0.000000e+00> : vector<8x128xf32>
    %30 = tpu.matmul %28, %29, %cst {dimension_numbers = #tpu.dot_dimension_numbers<[1], [0], [0], [1], [0, 0, 1, 1], [], []>} : vector<8x128xbf16>, vector<128x128xbf16>, vector<8x128xf32> -> vector<8x128xf32>
    %31 = arith.truncf %30 : vector<8x128xf32> to vector<8x128xbf16>
    %c0_5 = arith.constant 0 : index
    %c0_6 = arith.constant 0 : index
    %32 = vector.load %arg4[%c0_5, %c0_6] : memref<8x128xbf16, #tpu.memory_space<vmem>>, vector<8x128xbf16>
    tpu.vector_store %arg4[%c0_5, %c0_6], %31 {strides = array<i32>} : memref<8x128xbf16, #tpu.memory_space<vmem>>, vector<8x128xbf16>,
    return
  }
  func.func @transform_0(%arg0: i32) -> (i32, i32) {
    %c0_i32 = arith.constant 0 : i32
    %c0_i32_0 = arith.constant 0 : i32
    return %arg0, %c0_i32 : i32, i32
  }
  func.func @transform_1(%arg0: i32) -> (i32, i32) {
    %c0_i32 = arith.constant 0 : i32
    %c0_i32_0 = arith.constant 0 : i32
    %c0_i32_1 = arith.constant 0 : i32
    return %c0_i32, %c0_i32_0 : i32, i32
  }
  func.func @transform_2(%arg0: i32) -> (i32, i32) {
    %c0_i32 = arith.constant 0 : i32
    %c0_i32_0 = arith.constant 0 : i32
    %c0_i32_1 = arith.constant 0 : i32
    return %c0_i32, %c0_i32_0 : i32, i32
  }
  func.func @transform_3(%arg0: i32) -> (i32, i32) {
    %c0_i32 = arith.constant 0 : i32
    %c0_i32_0 = arith.constant 0 : i32
    return %arg0, %c0_i32 : i32, i32
  }
}

</mosaic_0001>

<bundles_post_ra>
// kernel: model_forward_padded.1
= control target key start
LH: loop header
LB: loop body
LE: loop exit
PB: predicated region body
PF: predicated region fallthrough
CT: control target
= control target key end

     0   :  { %8 = vsyncpa [#allocation3], 0  ;;  %s843_s0 = inlined_call_operand.vmem [shape: f32[16,4], index: 0, kind: input, shape index: {}]   ;;  %s844_s1 = inlined_call_operand.vmem [shape: f32[4,256], index: 1, kind: input, shape index: {}]   ;;  %s845_s2 = inlined_call_operand.hbm [shape: bf16[128,128], index: 2, kind: input, shape index: {}]   ;;  %s846_s3 = inlined_call_operand.hbm [shape: bf16[16,128], index: 3, kind: output, shape index: {}]  }
   0x1   :  { %9 = vsyncpa [#allocation4], 0 }
   0x2   :  { %11 = vsyncpa [#allocation4 + $0x1], 0  ;;  %s723_s12 = smov 0   ;;  %s725_s13 = smov 0  }
   0x3   :  { %s727_s14 = smov 0   ;;  %s729_s15 = smov 0  }
   0x4 LB: > { %s744_s16 = sadd.s32 4294967295, %s691_s15   ;;  %s481_s17 = sadd.s32 4294967294, %s691_s15   ;;  %s691_s15 = sphi %s729_s15, %s854_s15   ;;  %s687_s14 = sphi %s727_s14, %s853_s14   ;;  %s683_s13 = sphi %s725_s13, %s852_s13   ;;  %s679_s12 = sphi %s723_s12, %s851_s12  }
   0x5   : > { %s748_s18 = sadd.s32 1, %s691_s15   ;;  %s92_s19 = sadd.s32 1, %s687_s14 }
   0x6   : > { %s89_s20 = ssub.s32 %s691_s15, %s748_s18  ;;  %p102_p0 = scmp.ne.s32.totalorder %s687_s14, %s683_s13 }
   0x7   : > { %p90_p1 = scmp.eq.s32.totalorder %s89_s20, 0  ;;  %p103_p2 = scmp.eq.s32.totalorder %s744_s16, 1 }
   0x8   : > { %p108_p3 = scmp.ne.s32.totalorder %s683_s13, %s679_s12  ;;  %p109_p4 = scmp.eq.s32.totalorder %s481_s17, 1 }
   0x9   : > { %s759_s21 = scalar_select %p90_p1, %s687_s14, %s92_s19  }
   0xa   : > { %p761_p5 = por %p103_p2, %p102_p0  ;;  %p765_p6 = por %p109_p4, %p108_p3 }
   0xb   : > { %p482_p7 = scmp.ge.s32.totalorder %s691_s15, 1  ;;  %p116_p8 = scmp.lt.s32.totalorder %s691_s15, 3 }
   0xc   : > { %s848_s23 = scalar_select %p765_p6, 1, 0 }
   0xd   : > { %p544_p9 = scmp.eq.s32.totalorder %s744_s16, 0  ;;  %p772_p10 = pnand %p482_p7, %p116_p8 }
   0xe   : > { %s693_s25 = smov [#allocation2]  }
   0xf   : > { %s131_s26 = sshll.u32 %s693_s25, 4  ;;  %p536_p11 = pneg %p772_p10  ;;  %s132_s26 = int_to_ptr.vmem [resolvable:$true] %s131_s26 }
  0x10   : > { %s612_s27 = scalar_lea.vmem %s132_s26, 1024  ;;  %p620_p3 = scmp.lt.s32.totalorder %s132_s26, %s132_s26 }
  0x11   : > { %p537_p12 = pnand %p544_p9, %p536_p11  ;;  %p613_p0 = scmp.ne.s32.totalorder %s132_s26, %s612_s27 }
  0x12   : > { %p621_p4 = scmp.lt.s32.totalorder %s612_s27, %s612_s27 }
  0x13   : > { %p603_p13 = pneg %p537_p12 }
  0x14   : > { %p622_p6 = por %p621_p4, %p620_p3 }
  0x15   : > { %p615_p1 = pnand %p613_p0, %p603_p13 }
  0x17   : > { %p616_p2 = pneg %p615_p1 }
  0x19   : > { %p623_p7 = pnand %p622_p6, %p616_p2 }
  0x1b   : > { %626 = shalt.err (!%p623_p7)
}
  0x1c   : > { %s694_s28 = smov 64   ;;  %s695_s29 = smov 4  }
  0x1d   : > { %539 = dma.hbm_to_vmem [thread:$0]  (!%p537_p12), %s845_s2, 1024, %s132_s26, [#allocation3], %s694_s28, %s694_s28, %s695_s29  }
  0x1e   : > { %154 = sbr.rel (%p772_p10) target bundleno = 393 (0x189), region = 32 }
  0x23   : > { %670 = dma.done.wait (%p544_p9), [#allocation3], 1024  }
  0x24   : > { %672 = vsyncadd (%p544_p9), [#allocation3], 4294966272  ;;  %p177_p8 = scmp.lt.s32.totalorder %s744_s16, 1  ;;  %v696_v0 = vmov 0   ;;  %v697_v1 = vmov 2   ;;  %v698_v2 = vmov 0.0   ;;  %v190_v14 = vlaneseq }
  0x25   : > { %588 = vset.pattern.permute.xlu0 %v696_v0  ;;  %590 = vset.pattern.permute.xlu1 %v697_v1  ;;  %v593_v4 = vld [vmem:[#allocation2 + $0x38] sm:$0xff]   ;;  %v594_v5 = vld [vmem:[#allocation2 + $0x30] sm:$0xff]   ;;  %v699_v6 = vmov 1   ;;  %v700_v7 = vmov 3   ;;  %v595_v8 = vld [vmem:[#allocation2 + $0x28] sm:$0xff]   ;;  %vm701_vm0 = vmmov 0  }
  0x26   : > { %s178_s5 = scalar_select %p177_p8, %s744_s16, 1  ;;  %510 = vmatprep.subr.bf16.mxu0 %v698_v2  ;;  %526 = vmatprep.mubr.msk.bf16.mxu0 %vm701_vm0, %v698_v2  ;;  %v596_v9 = vld [vmem:[#allocation2 + $0x20] sm:$0xff]   ;;  %v597_v10 = vld [vmem:[#allocation2 + $0x18] sm:$0xff]   ;;  %v598_v11 = vld [vmem:[#allocation2 + $0x10] sm:$0xff]   ;;  %v191_v15 = vshrl.u32 %v190_v14, 7 }
  0x27   : > { %511 = vmatpush3.bf16.msra.mxu0 %v593_v4  ;;  %v599_v12 = vld [vmem:[#allocation2 + $0x8] sm:$0xff]   ;;  %v600_v13 = vld [vmem:[#allocation2] sm:$0xff]   ;;  %s174_s17 = sand.u32 1, %s683_s13   ;;  %s498_s20 = sshll.u32 %s744_s16, 6 }
  0x28   : > { %s488_s6 = sshll.u32 %s178_s5, 3  ;;  %512 = vmatprep.subr.bf16.mxu0 %v698_v2  ;;  %v192_v16 = vsub.s32 0, %v191_v15  ;;  %v196_v17 = vsub.s32 4, %v191_v15  ;;  %v216_v18 = vsub.s32 1, %v191_v15  ;;  %v220_v19 = vsub.s32 5, %v191_v15  ;;  %v183_v20 = vld [vmem:[%s844_s1] sm:$0xff]  ;;  %s802_s28 = scalar_lea.hbm %s846_s3, %s498_s20 }
  0x29   : > { %s180_s9 = scalar_lea.vmem %s843_s0, %s488_s6  ;;  %v242_v21 = vsub.s32 2, %v191_v15  ;;  %v246_v22 = vsub.s32 6, %v191_v15  ;;  %v268_v23 = vsub.s32 3, %v191_v15  ;;  %v272_v24 = vsub.s32 7, %v191_v15  ;;  %s487_s19 = sshll.u32 %s174_s17, 2 }
  0x2a   : > { %v182_v3 = vld [vmem:[%s180_s9] sm:$0xff]  ;;  %v193_v25 = vrot.slane %v183_v20, %v192_v16  ;;  %v197_v26 = vrot.slane %v183_v20, %v196_v17  ;;  %v217_v27 = vrot.slane %v183_v20, %v216_v18  ;;  %v221_v28 = vrot.slane %v183_v20, %v220_v19  ;;  %s176_s24 = scalar_lea.vmem [#allocation5], %s487_s19  ;;  %s397_s29 = scalar_lea.sflag [#allocation4], %s174_s17 }
  0x2b   : > { %186 = vperm.xlu0 %588, %v182_v3   ;;  %237 = vperm.xlu1 %590, %v182_v3   ;;  %v243_v29 = vrot.slane %v183_v20, %v242_v21  ;;  %v247_v30 = vrot.slane %v183_v20, %v246_v22  ;;  %v269_v33 = vrot.slane %v183_v20, %v268_v23  ;;  %s410_s25 = sshll.u32 %s176_s24, 4  ;;  %s702_s16 = smov [#allocation5]   ;;  %s804_s25 = int_to_ptr.vmem [resolvable:$true] %s410_s25 }
  0x2c   : > { %513 = vmatpush3.bf16.msra.mxu0 %v594_v5  ;;  %v273_v34 = vrot.slane %v183_v20, %v272_v24  ;;  %v203_v35 = vrot.slane %v193_v25, %v192_v16  ;;  %v207_v36 = vrot.slane %v197_v26, %v192_v16  ;;  %v227_v37 = vrot.slane %v217_v27, %v216_v18  ;;  %s627_s30 = scalar_lea.vmem %s804_s25, 64  ;;  %s631_s4 = sshll.u32 %s702_s16, 4  ;;  %s632_s4 = int_to_ptr.vmem [resolvable:$false] %s631_s4 }
  0x2d   : > { %514 = vmatprep.subr.bf16.mxu0 %v698_v2  ;;  %v231_v38 = vrot.slane %v221_v28, %v216_v18  ;;  %v253_v39 = vrot.slane %v243_v29, %v242_v21  ;;  %v257_v40 = vrot.slane %v247_v30, %v242_v21  ;;  %v279_v41 = vrot.slane %v269_v33, %v268_v23  ;;  %p628_p6 = scmp.ne.s32.totalorder %s804_s25, %s627_s30  ;;  %s633_s5 = scalar_lea.vmem %s632_s4, 128 }
  0x2e   : > { %v283_v42 = vrot.slane %v273_v34, %v268_v23  ;;  %p634_p11 = scmp.lt.s32.totalorder %s804_s25, %s632_s4  ;;  %p635_p12 = scmp.lt.s32.totalorder %s633_s5, %s627_s30 }
  0x2f   : > { %589 = vset.pattern.permute.xlu0 %v699_v6  ;;  %591 = vset.pattern.permute.xlu1 %v700_v7  ;;  %p629_p9 = pnand %p628_p6, %p761_p5 }
  0x30   : > { %211 = vperm.xlu0 %589, %v182_v3   ;;  %263 = vperm.xlu1 %591, %v182_v3   ;;  %p636_p13 = por %p635_p12, %p634_p11 }
  0x31   : > { %515 = vmatpush3.bf16.msra.mxu0 %v595_v8  ;;  %p630_p10 = pneg %p629_p9 }
  0x32   : > { %516 = vmatprep.subr.bf16.mxu0 %v698_v2 }
  0x33   : > { %p637_p0 = pnand %p636_p13, %p630_p10 }
  0x34   : > { %592 = vset.pattern.permute.xlu0 %v700_v7 }
  0x35   : > { %517 = vmatpush3.bf16.msra.mxu0 %v596_v9 }
  0x36   : > { %518 = vmatprep.subr.bf16.mxu0 %v698_v2 }
  0x39   : > { %519 = vmatpush3.bf16.msra.mxu0 %v597_v10 }
  0x3a   : > { %520 = vmatprep.subr.bf16.mxu0 %v698_v2 }
  0x3d   : > { %521 = vmatpush3.bf16.msra.mxu0 %v598_v11 }
  0x3e   : > { %522 = vmatprep.subr.bf16.mxu0 %v698_v2 }
  0x41   : > { %523 = vmatpush3.bf16.msra.mxu0 %v599_v12 }
  0x42   : > { %524 = vmatprep.subr.bf16.mxu0 %v698_v2 }
  0x45   : > { %525 = vmatpush3.bf16.msra.mxu0 %v600_v13 }
  0xa6   : > { %v187_v31 = vpop.permute.xlu0 %186  ;;  %v238_v32 = vpop.permute.xlu1 %237 }
  0xa7   : > { %v208_v45 = vmul.f32 %v203_v35, %v187_v31  ;;  %v209_v46 = vmul.f32 %v207_v36, %v187_v31  ;;  %v258_v49 = vmul.f32 %v253_v39, %v238_v32  ;;  %v259_v50 = vmul.f32 %v257_v40, %v238_v32 }
  0xab   : > { %v212_v43 = vpop.permute.xlu0 %211  ;;  %v264_v44 = vpop.permute.xlu1 %263 }
  0xac   : > { %v232_v47 = vmul.f32 %v227_v37, %v212_v43  ;;  %v233_v48 = vmul.f32 %v231_v38, %v212_v43  ;;  %v284_v53 = vmul.f32 %v279_v41, %v264_v44  ;;  %v285_v54 = vmul.f32 %v283_v42, %v264_v44 }
  0xae   : > { %v234_v51 = vadd.f32 %v232_v47, %v208_v45  ;;  %v235_v52 = vadd.f32 %v233_v48, %v209_v46 }
  0xb0   : > { %v260_v55 = vadd.f32 %v258_v49, %v234_v51  ;;  %v261_v56 = vadd.f32 %v259_v50, %v235_v52 }
  0xb2   : > { %v286_v57 = vadd.f32 %v284_v53, %v260_v55  ;;  %v287_v58 = vadd.f32 %v285_v54, %v261_v56 }
  0xb4   : > { %v288_v59 = vmul.f32 %v287_v58, %v286_v57 }
  0xb6   : > { %v289_v60 = vpack.c.bf16 %v288_v59, %v288_v59 }
  0xb8   : > { %527 = vmatmul.mubr.bf16.vlgmr.msra.gmra.mxu0 %v289_v60 }
 0x178   : > { %v388_v61 = vpop.f32.mrf.mxu0 }
 0x179   : > { %v394_v62 = vpack.c.bf16 %v388_v61, %v388_v61 }
 0x17a   : > { %v528_v63 = vpop.f32.mrf.mxu0 }
 0x17b   : > { %395 = vst [vmem:[%s176_s24] sm:$0xf] %v394_v62 }
 0x17c   : > { %v391_v0 = vpop.f32.mrf.mxu0 }
 0x17d   : > { %640 = shalt.err (!%p637_p0)
}
 0x17e   : > { %s641_s6 = scalar_lea.hbm %s802_s28, 64  ;;  %s645_s9 = scalar_lea.hbm %s846_s3, 128 }
 0x17f   : > { %p642_p1 = scmp.ne.s32.totalorder %s802_s28, %s641_s6  ;;  %p646_p4 = scmp.lt.s32.totalorder %s802_s28, %s846_s3 }
 0x180   : > { %p647_p7 = scmp.lt.s32.totalorder %s645_s9, %s641_s6 }
 0x181   : > { %p643_p2 = pnand %p642_p1, %p761_p5 }
 0x182   : > { %p648_p8 = por %p647_p7, %p646_p4 }
 0x183   : > { %p644_p3 = pneg %p643_p2 }
 0x185   : > { %p649_p6 = pnand %p648_p8, %p644_p3 }
 0x187   : > { %652 = shalt.err (!%p649_p6)
}
 0x188   : > { %534 = dma.vmem_to_hbm [thread:$0]  (%p761_p5), %s804_s25, 64, %s802_s28, %s397_s29   ;;  %v529_v1 = vpop.f32.mrf.mxu0 }
 0x189 PF: > { %p546_p9 = scmp.ge.s32.totalorder %s691_s15, 2  ;;  %s422_s17 = sand.u32 1, %s679_s12  }
 0x18a   : > { %p850_p10 = scmp.ne.s32.totalorder %s848_s23, 0  ;;  %s423_s19 = scalar_lea.sflag [#allocation4], %s422_s17 }
 0x18c   : > { %p541_p11 = pnand %p546_p9, %p850_p10 }
 0x18e   : > { %p542_p12 = pneg %p541_p11 }
 0x190   : > { %674 = dma.done.wait (%p542_p12), %s423_s19, 64  }
 0x191   : > { %676 = vsyncadd (%p542_p12), %s423_s19, 4294967232  ;;  %p14_p13 = scmp.ge.s32.totalorder %s748_s18, 4   ;;  %s851_s12 = smov %s683_s13 }
 0x192   : > { %s852_s13 = smov %s687_s14  ;;  %s853_s14 = smov %s759_s21 }
 0x193   : > { %s854_s15 = smov %s748_s18  ;;  %16 = sbr.rel (!%p14_p13) target bundleno = 4 (0x4), region = 72 }
 0x198   :  { %428 = vsyncpa [#allocation3], 1 }
 0x199   :  { %430 = vsyncpa [#allocation3 + $0x1], 1 }
 0x19a   :  { %431 = vsyncpa [#allocation4], 1 }
 0x19b   :  { %433 = vsyncpa [#allocation4 + $0x1], 1 }

</bundles_post_ra>
